<compile_context>
chip_gen: v7x
topology: tpu7x:2x2x1
jax: 0.10.0
libtpu: 0.0.40
codegen_flags: <defaults>
</compile_context>

<pallas_src>
import jax
import jax.numpy as jnp
from jax.experimental import pallas as pl
from jax.experimental.pallas import tpu as pltpu


# ------------------------------- kernels ---------------------------------


def _unembed_tile_kernel(x_ref, o_ref):
    # x_ref: (t_hw, C), o_ref: (C, t_hw).  Lowers to XLU vxpose.
    o_ref[...] = x_ref[...].T


def _unembed_small_kernel(x_ref, o_ref):
    # Whole arrays resident in VMEM, single grid step: fold B into the block.
    # x_ref: (B, HW, C), o_ref: (B, C, HW).
    for b in range(x_ref.shape[0]):  # B is a small static constant here.
        o_ref[b] = x_ref[b].T


# ------------------------------ tile sizing --------------------------------


def _round_up(x, m):
    return ((x + m - 1) // m) * m


def _sublane_pack(itemsize):
    # Rows per vreg: f32 -> 8, bf16 -> 16, int8/fp8 -> 32.
    return {4: 8, 2: 16, 1: 32}.get(itemsize, 8)


def _padded_row_bytes(c, itemsize):
    """Padded bytes contributed by one HW row in the input tile + output tile."""
    c_lane = _round_up(c, 128)                       # input (t_hw, C): C on lanes
    c_sub = _round_up(c, _sublane_pack(itemsize))    # output (C, t_hw): C on sublanes
    return (c_lane + c_sub) * itemsize


def _pick_hw_tile(hw, c, itemsize, budget_bytes=8 << 20, cap=2048):
    """Largest 128-multiple HW tile whose 2x-buffered padded footprint fits."""
    per_row = _padded_row_bytes(c, itemsize)
    t = (budget_bytes // (2 * per_row)) // 128 * 128
    t = max(128, min(t, cap))
    # No point tiling past the (128-padded) extent of HW.
    return min(t, _round_up(hw, 128))


# ------------------------------- wrapper ----------------------------------


def patch_unembed(x, x_size, embed_dim):
    """x: (B, HW, C) -> (B, embed_dim, H, W), NCHW like the PyTorch module."""
    B, HW, C = x.shape
    H, W = x_size
    assert C == embed_dim, "channel dim must equal embed_dim"
    assert HW == H * W, "sequence length must equal H*W"

    itemsize = jnp.dtype(x.dtype).itemsize
    pack = _sublane_pack(itemsize)

    # Whole-array padded footprint (input + output) in VMEM.
    whole_bytes = B * (
        _round_up(HW, pack) * _round_up(C, 128)          # (B, HW, C) input
        + _round_up(C, pack) * _round_up(HW, 128)        # (B, C, HW) output
    ) * itemsize

    if whole_bytes <= (2 << 20):
        # Tiny input: single grid step, fold B into the block (overhead, not
        # bandwidth, dominates here).
        out_t = pl.pallas_call(
            _unembed_small_kernel,
            out_shape=jax.ShapeDtypeStruct((B, C, HW), x.dtype),
        )(x)
    else:
        t_hw = _pick_hw_tile(HW, C, itemsize)
        n_hw = pl.cdiv(HW, t_hw)

        out_t = pl.pallas_call(
            _unembed_tile_kernel,
            out_shape=jax.ShapeDtypeStruct((B, C, HW), x.dtype),
            grid_spec=pltpu.PrefetchScalarGridSpec(
                num_scalar_prefetch=0,
                grid=(B, n_hw),
                in_specs=[
                    pl.BlockSpec((pl.Squeezed(), t_hw, C),
                                 lambda b, t: (b, t, 0)),
                ],
                out_specs=pl.BlockSpec((pl.Squeezed(), C, t_hw),
                                       lambda b, t: (b, 0, t)),
            ),
            compiler_params=pltpu.CompilerParams(
                dimension_semantics=("parallel", "parallel"),
                vmem_limit_bytes=32 * 1024 * 1024,
            ),
        )(x)

    # .view(B, embed_dim, H, W) equivalent — pure metadata reshape.
    return out_t.reshape(B, embed_dim, H, W)


# -------------------------------- demo -------------------------------------


if __name__ == "__main__":
    root = jax.random.PRNGKey(0)
    k1, k2 = jax.random.split(root)

    # Case 1: tiny input (exercises the single-step folded-batch path).
    B, embed_dim, H, W = 2, 32, 16, 16
    x1 = jax.random.normal(k1, (B, H * W, embed_dim), dtype=jnp.float32)
    out1 = jax.block_until_ready(patch_unembed(x1, (H, W), embed_dim))
    ref1 = jnp.swapaxes(x1, 1, 2).reshape(B, embed_dim, H, W)
    assert out1.shape == (B, embed_dim, H, W)
    assert out1.dtype == x1.dtype
    assert jnp.array_equal(out1, ref1)

    # Case 2: larger, non-tile-multiple HW (exercises the cdiv-tiled path with
    # a ragged last block: HW = 6400 = 3*2048 + 256).
    B2, embed_dim2, H2, W2 = 1, 60, 80, 80
    x2 = jax.random.normal(k2, (B2, H2 * W2, embed_dim2), dtype=jnp.float32)
    out2 = jax.block_until_ready(patch_unembed(x2, (H2, W2), embed_dim2))
    ref2 = jnp.swapaxes(x2, 1, 2).reshape(B2, embed_dim2, H2, W2)
    assert out2.shape == (B2, embed_dim2, H2, W2)
    assert out2.dtype == x2.dtype
    assert jnp.array_equal(out2, ref2)

    print("KERNEL_OK")
</pallas_src>

<mosaic_0001>
module attributes {stable_mosaic.version = 11 : i64} {
  func.func @_unembed_small_kernel(%arg0: memref<2x256x32xf32, #tpu.memory_space<vmem>>, %arg1: memref<2x32x256xf32, #tpu.memory_space<vmem>>) attributes {dimension_semantics = [], scalar_prefetch = 0 : i64, scratch_operands = 0 : i64, tpu.core_type = #tpu.core_type<tc>} {
    %c0 = arith.constant 0 : index
    %c0_0 = arith.constant 0 : index
    %c0_1 = arith.constant 0 : index
    %0 = vector.load %arg0[%c0, %c0_0, %c0_1] : memref<2x256x32xf32, #tpu.memory_space<vmem>>, vector<1x256x32xf32>
    %1 = vector.shape_cast %0 : vector<1x256x32xf32> to vector<256x32xf32>
    %2 = tpu.transpose %1, [1, 0] : vector<256x32xf32> -> vector<32x256xf32>
    %c0_2 = arith.constant 0 : index
    %c0_3 = arith.constant 0 : index
    %c0_4 = arith.constant 0 : index
    %3 = vector.load %arg1[%c0_2, %c0_3, %c0_4] : memref<2x32x256xf32, #tpu.memory_space<vmem>>, vector<1x32x256xf32>
    %4 = vector.shape_cast %3 : vector<1x32x256xf32> to vector<32x256xf32>
    %5 = vector.shape_cast %2 : vector<32x256xf32> to vector<1x32x256xf32>
    tpu.vector_store %arg1[%c0_2, %c0_3, %c0_4], %5 {strides = array<i32>} : memref<2x32x256xf32, #tpu.memory_space<vmem>>, vector<1x32x256xf32>,
    %c1 = arith.constant 1 : index
    %c0_5 = arith.constant 0 : index
    %c0_6 = arith.constant 0 : index
    %6 = vector.load %arg0[%c1, %c0_5, %c0_6] : memref<2x256x32xf32, #tpu.memory_space<vmem>>, vector<1x256x32xf32>
    %7 = vector.shape_cast %6 : vector<1x256x32xf32> to vector<256x32xf32>
    %8 = tpu.transpose %7, [1, 0] : vector<256x32xf32> -> vector<32x256xf32>
    %c1_7 = arith.constant 1 : index
    %c0_8 = arith.constant 0 : index
    %c0_9 = arith.constant 0 : index
    %9 = vector.load %arg1[%c1_7, %c0_8, %c0_9] : memref<2x32x256xf32, #tpu.memory_space<vmem>>, vector<1x32x256xf32>
    %10 = vector.shape_cast %9 : vector<1x32x256xf32> to vector<32x256xf32>
    %11 = vector.shape_cast %8 : vector<32x256xf32> to vector<1x32x256xf32>
    tpu.vector_store %arg1[%c1_7, %c0_8, %c0_9], %11 {strides = array<i32>} : memref<2x32x256xf32, #tpu.memory_space<vmem>>, vector<1x32x256xf32>,
    return
  }
}

</mosaic_0001>

<bundles_post_ra>
// kernel: tpu_custom_call.1
= control target key start
LH: loop header
LB: loop body
LE: loop exit
PB: predicated region body
PF: predicated region fallthrough
CT: control target
= control target key end

     0   :  { %s511_s0 = inlined_call_operand.vmem [shape: f32[2,256,32], index: 0, kind: input, shape index: {}]   ;;  %s512_s1 = inlined_call_operand.hbm [shape: f32[2,32,256], index: 1, kind: output, shape index: {}]  }
   0x1   :  { %v25_v0 = vld [vmem:[%s511_s0 + $0x80] sm:$0xff]  ;;  %v26_v2 = vld [vmem:[%s511_s0 + $0x88] sm:$0xff]  ;;  %v27_v4 = vld [vmem:[%s511_s0 + $0x90] sm:$0xff] }
   0x2   :  { %v9_v1 = vld [vmem:[%s511_s0] sm:$0xff]  ;;  %73 = vxpose.xlu1.b32.start [1/16] (narrow) %v25_v0, 32  ;;  %v10_v3 = vld [vmem:[%s511_s0 + $0x8] sm:$0xff]  ;;  %v11_v5 = vld [vmem:[%s511_s0 + $0x10] sm:$0xff] }
   0x3   :  { %41 = vxpose.xlu0.b32.start [1/16] (narrow) %v9_v1, 32  ;;  %v28_v6 = vld [vmem:[%s511_s0 + $0x98] sm:$0xff]  ;;  %v29_v8 = vld [vmem:[%s511_s0 + $0xa0] sm:$0xff]  ;;  %v30_v10 = vld [vmem:[%s511_s0 + $0xa8] sm:$0xff] }
   0x4   :  { %v12_v7 = vld [vmem:[%s511_s0 + $0x18] sm:$0xff]  ;;  %v13_v9 = vld [vmem:[%s511_s0 + $0x20] sm:$0xff]  ;;  %v14_v11 = vld [vmem:[%s511_s0 + $0x28] sm:$0xff] }
   0x6   :  { %74 = vxpose.xlu1.b32.cont [2/16] (narrow) %v26_v2, 32 }
   0x7   :  { %42 = vxpose.xlu0.b32.cont [2/16] (narrow) %v10_v3, 32 }
   0xa   :  { %75 = vxpose.xlu1.b32.cont [3/16] (narrow) %v27_v4, 32 }
   0xb   :  { %43 = vxpose.xlu0.b32.cont [3/16] (narrow) %v11_v5, 32 }
   0xe   :  { %76 = vxpose.xlu1.b32.cont [4/16] (narrow) %v28_v6, 32 }
   0xf   :  { %44 = vxpose.xlu0.b32.cont [4/16] (narrow) %v12_v7, 32 }
  0x12   :  { %77 = vxpose.xlu1.b32.cont [5/16] (narrow) %v29_v8, 32 }
  0x13   :  { %45 = vxpose.xlu0.b32.cont [5/16] (narrow) %v13_v9, 32 }
  0x16   :  { %78 = vxpose.xlu1.b32.cont [6/16] (narrow) %v30_v10, 32 }
  0x17   :  { %46 = vxpose.xlu0.b32.cont [6/16] (narrow) %v14_v11, 32 }
  0x18   :  { %6 = vsyncpa [#allocation3], 0  ;;  %v31_v12 = vld [vmem:[%s511_s0 + $0xb0] sm:$0xff]  ;;  %v32_v14 = vld [vmem:[%s511_s0 + $0xb8] sm:$0xff] }
  0x19   :  { %v15_v13 = vld [vmem:[%s511_s0 + $0x30] sm:$0xff]  ;;  %v16_v15 = vld [vmem:[%s511_s0 + $0x38] sm:$0xff]  ;;  %v33_v16 = vld [vmem:[%s511_s0 + $0xc0] sm:$0xff] }
  0x1a   :  { %79 = vxpose.xlu1.b32.cont [7/16] (narrow) %v31_v12, 32  ;;  %v17_v17 = vld [vmem:[%s511_s0 + $0x40] sm:$0xff]  ;;  %v34_v18 = vld [vmem:[%s511_s0 + $0xc8] sm:$0xff]  ;;  %v35_v20 = vld [vmem:[%s511_s0 + $0xd0] sm:$0xff] }
  0x1b   :  { %47 = vxpose.xlu0.b32.cont [7/16] (narrow) %v15_v13, 32  ;;  %v18_v19 = vld [vmem:[%s511_s0 + $0x48] sm:$0xff]  ;;  %v19_v21 = vld [vmem:[%s511_s0 + $0x50] sm:$0xff]  ;;  %v36_v22 = vld [vmem:[%s511_s0 + $0xd8] sm:$0xff] }
  0x1c   :  { %v20_v23 = vld [vmem:[%s511_s0 + $0x58] sm:$0xff]  ;;  %v37_v24 = vld [vmem:[%s511_s0 + $0xe0] sm:$0xff]  ;;  %v38_v26 = vld [vmem:[%s511_s0 + $0xe8] sm:$0xff] }
  0x1d   :  { %v21_v25 = vld [vmem:[%s511_s0 + $0x60] sm:$0xff]  ;;  %v22_v27 = vld [vmem:[%s511_s0 + $0x68] sm:$0xff]  ;;  %v39_v28 = vld [vmem:[%s511_s0 + $0xf0] sm:$0xff] }
  0x1e   :  { %80 = vxpose.xlu1.b32.cont [8/16] (narrow) %v32_v14, 32  ;;  %v23_v29 = vld [vmem:[%s511_s0 + $0x70] sm:$0xff]  ;;  %v40_v30 = vld [vmem:[%s511_s0 + $0xf8] sm:$0xff]  ;;  %v251_v32 = vld [vmem:[%s511_s0 + $0x180] sm:$0xff] }
  0x1f   :  { %48 = vxpose.xlu0.b32.cont [8/16] (narrow) %v16_v15, 32  ;;  %v24_v31 = vld [vmem:[%s511_s0 + $0x78] sm:$0xff]  ;;  %v235_v33 = vld [vmem:[%s511_s0 + $0x100] sm:$0xff]  ;;  %v252_v34 = vld [vmem:[%s511_s0 + $0x188] sm:$0xff] }
  0x20   :  { %v236_v35 = vld [vmem:[%s511_s0 + $0x108] sm:$0xff]  ;;  %v253_v36 = vld [vmem:[%s511_s0 + $0x190] sm:$0xff]  ;;  %v254_v38 = vld [vmem:[%s511_s0 + $0x198] sm:$0xff] }
  0x21   :  { %v237_v37 = vld [vmem:[%s511_s0 + $0x110] sm:$0xff]  ;;  %v238_v39 = vld [vmem:[%s511_s0 + $0x118] sm:$0xff]  ;;  %v255_v40 = vld [vmem:[%s511_s0 + $0x1a0] sm:$0xff] }
  0x22   :  { %81 = vxpose.xlu1.b32.cont [9/16] (narrow) %v33_v16, 32  ;;  %v239_v41 = vld [vmem:[%s511_s0 + $0x120] sm:$0xff]  ;;  %v256_v42 = vld [vmem:[%s511_s0 + $0x1a8] sm:$0xff]  ;;  %v257_v44 = vld [vmem:[%s511_s0 + $0x1b0] sm:$0xff] }
  0x23   :  { %49 = vxpose.xlu0.b32.cont [9/16] (narrow) %v17_v17, 32  ;;  %v240_v43 = vld [vmem:[%s511_s0 + $0x128] sm:$0xff]  ;;  %v241_v45 = vld [vmem:[%s511_s0 + $0x130] sm:$0xff]  ;;  %v258_v46 = vld [vmem:[%s511_s0 + $0x1b8] sm:$0xff] }
  0x24   :  { %v242_v47 = vld [vmem:[%s511_s0 + $0x138] sm:$0xff]  ;;  %v259_v48 = vld [vmem:[%s511_s0 + $0x1c0] sm:$0xff]  ;;  %v260_v50 = vld [vmem:[%s511_s0 + $0x1c8] sm:$0xff] }
  0x25   :  { %v243_v49 = vld [vmem:[%s511_s0 + $0x140] sm:$0xff]  ;;  %v244_v51 = vld [vmem:[%s511_s0 + $0x148] sm:$0xff]  ;;  %v261_v52 = vld [vmem:[%s511_s0 + $0x1d0] sm:$0xff] }
  0x26   :  { %82 = vxpose.xlu1.b32.cont [10/16] (narrow) %v34_v18, 32  ;;  %v245_v53 = vld [vmem:[%s511_s0 + $0x150] sm:$0xff]  ;;  %v262_v54 = vld [vmem:[%s511_s0 + $0x1d8] sm:$0xff]  ;;  %v263_v56 = vld [vmem:[%s511_s0 + $0x1e0] sm:$0xff] }
  0x27   :  { %50 = vxpose.xlu0.b32.cont [10/16] (narrow) %v18_v19, 32  ;;  %v246_v55 = vld [vmem:[%s511_s0 + $0x158] sm:$0xff]  ;;  %v247_v57 = vld [vmem:[%s511_s0 + $0x160] sm:$0xff]  ;;  %v264_v58 = vld [vmem:[%s511_s0 + $0x1e8] sm:$0xff] }
  0x28   :  { %v248_v59 = vld [vmem:[%s511_s0 + $0x168] sm:$0xff]  ;;  %v265_v60 = vld [vmem:[%s511_s0 + $0x1f0] sm:$0xff]  ;;  %v266_v62 = vld [vmem:[%s511_s0 + $0x1f8] sm:$0xff] }
  0x29   :  { %v249_v61 = vld [vmem:[%s511_s0 + $0x170] sm:$0xff]  ;;  %v250_v63 = vld [vmem:[%s511_s0 + $0x178] sm:$0xff]  ;;  %s294_s0 = smov [#allocation2]  }
  0x2a   :  { %83 = vxpose.xlu1.b32.cont [11/16] (narrow) %v35_v20, 32  ;;  %s224_s18 = sshll.u32 %s294_s0, 4  ;;  %s225_s18 = int_to_ptr.vmem [resolvable:$true] %s224_s18 }
  0x2b   :  { %51 = vxpose.xlu0.b32.cont [11/16] (narrow) %v19_v21, 32  ;;  %s270_s19 = scalar_lea.vmem %s225_s18, 2048  ;;  %p275_p1 = scmp.lt.s32.totalorder %s225_s18, %s225_s18 }
  0x2c   :  { %p271_p0 = scmp.ne.s32.totalorder %s225_s18, %s270_s19  ;;  %p276_p2 = scmp.lt.s32.totalorder %s270_s19, %s270_s19 }
  0x2e   :  { %84 = vxpose.xlu1.b32.cont [12/16] (narrow) %v36_v22, 32  ;;  %p277_p3 = por %p276_p2, %p275_p1 }
  0x2f   :  { %52 = vxpose.xlu0.b32.cont [12/16] (narrow) %v20_v23, 32 }
  0x30   :  { %p278_p4 = pnand %p277_p3, %p271_p0 }
  0x32   :  { %85 = vxpose.xlu1.b32.cont [13/16] (narrow) %v37_v24, 32 }
  0x33   :  { %53 = vxpose.xlu0.b32.cont [13/16] (narrow) %v21_v25, 32 }
  0x36   :  { %86 = vxpose.xlu1.b32.cont [14/16] (narrow) %v38_v26, 32 }
  0x37   :  { %54 = vxpose.xlu0.b32.cont [14/16] (narrow) %v22_v27, 32 }
  0x3a   :  { %87 = vxpose.xlu1.b32.cont [15/16] (narrow) %v39_v28, 32 }
  0x3b   :  { %55 = vxpose.xlu0.b32.cont [15/16] (narrow) %v23_v29, 32 }
  0x3e   :  { %88 = vxpose.xlu1.b32.end [16/16] (narrow) %v40_v30, 32 }
  0x3f   :  { %56 = vxpose.xlu0.b32.end [16/16] (narrow) %v24_v31, 32 }
  0x42   :  { %178 = vxpose.xlu1.b32.start [1/16] (narrow) %v251_v32, 32 }
  0x43   :  { %146 = vxpose.xlu0.b32.start [1/16] (narrow) %v235_v33, 32 }
  0x46   :  { %179 = vxpose.xlu1.b32.cont [2/16] (narrow) %v252_v34, 32 }
  0x47   :  { %147 = vxpose.xlu0.b32.cont [2/16] (narrow) %v236_v35, 32 }
  0x4a   :  { %180 = vxpose.xlu1.b32.cont [3/16] (narrow) %v253_v36, 32 }
  0x4b   :  { %148 = vxpose.xlu0.b32.cont [3/16] (narrow) %v237_v37, 32 }
  0x4e   :  { %181 = vxpose.xlu1.b32.cont [4/16] (narrow) %v254_v38, 32 }
  0x4f   :  { %149 = vxpose.xlu0.b32.cont [4/16] (narrow) %v238_v39, 32 }
  0x52   :  { %182 = vxpose.xlu1.b32.cont [5/16] (narrow) %v255_v40, 32 }
  0x53   :  { %150 = vxpose.xlu0.b32.cont [5/16] (narrow) %v239_v41, 32 }
  0x56   :  { %183 = vxpose.xlu1.b32.cont [6/16] (narrow) %v256_v42, 32 }
  0x57   :  { %151 = vxpose.xlu0.b32.cont [6/16] (narrow) %v240_v43, 32 }
  0x5a   :  { %184 = vxpose.xlu1.b32.cont [7/16] (narrow) %v257_v44, 32 }
  0x5b   :  { %152 = vxpose.xlu0.b32.cont [7/16] (narrow) %v241_v45, 32 }
  0x5e   :  { %185 = vxpose.xlu1.b32.cont [8/16] (narrow) %v258_v46, 32 }
  0x5f   :  { %153 = vxpose.xlu0.b32.cont [8/16] (narrow) %v242_v47, 32 }
  0x62   :  { %186 = vxpose.xlu1.b32.cont [9/16] (narrow) %v259_v48, 32 }
  0x63   :  { %154 = vxpose.xlu0.b32.cont [9/16] (narrow) %v243_v49, 32 }
  0x66   :  { %187 = vxpose.xlu1.b32.cont [10/16] (narrow) %v260_v50, 32 }
  0x67   :  { %155 = vxpose.xlu0.b32.cont [10/16] (narrow) %v244_v51, 32 }
  0x6a   :  { %188 = vxpose.xlu1.b32.cont [11/16] (narrow) %v261_v52, 32 }
  0x6b   :  { %156 = vxpose.xlu0.b32.cont [11/16] (narrow) %v245_v53, 32 }
  0x6e   :  { %189 = vxpose.xlu1.b32.cont [12/16] (narrow) %v262_v54, 32 }
  0x6f   :  { %157 = vxpose.xlu0.b32.cont [12/16] (narrow) %v246_v55, 32 }
  0x72   :  { %190 = vxpose.xlu1.b32.cont [13/16] (narrow) %v263_v56, 32 }
  0x73   :  { %158 = vxpose.xlu0.b32.cont [13/16] (narrow) %v247_v57, 32 }
  0x76   :  { %191 = vxpose.xlu1.b32.cont [14/16] (narrow) %v264_v58, 32 }
  0x77   :  { %159 = vxpose.xlu0.b32.cont [14/16] (narrow) %v248_v59, 32 }
  0x7a   :  { %192 = vxpose.xlu1.b32.cont [15/16] (narrow) %v265_v60, 32 }
  0x7b   :  { %160 = vxpose.xlu0.b32.cont [15/16] (narrow) %v249_v61, 32 }
  0x7e   :  { %193 = vxpose.xlu1.b32.end [16/16] (narrow) %v266_v62, 32 }
  0x7f   :  { %161 = vxpose.xlu0.b32.end [16/16] (narrow) %v250_v63, 32 }
  0x82   :  { %v89_v0 = vpop.trf.xlu1 }
  0x83   :  { %v57_v1 = vpop.trf.xlu0  ;;  %106 = vst [vmem:[#allocation2 + $0x8] sm:$0xff] %v89_v0 }
  0x84   :  { %105 = vst [vmem:[#allocation2] sm:$0xff] %v57_v1 }
  0x86   :  { %v90_v2 = vpop.trf.xlu1 }
  0x87   :  { %v58_v3 = vpop.trf.xlu0  ;;  %108 = vst [vmem:[#allocation2 + $0x18] sm:$0xff] %v90_v2 }
  0x88   :  { %107 = vst [vmem:[#allocation2 + $0x10] sm:$0xff] %v58_v3 }
  0x8a   :  { %v91_v4 = vpop.trf.xlu1 }
  0x8b   :  { %v59_v5 = vpop.trf.xlu0  ;;  %110 = vst [vmem:[#allocation2 + $0x28] sm:$0xff] %v91_v4 }
  0x8c   :  { %109 = vst [vmem:[#allocation2 + $0x20] sm:$0xff] %v59_v5 }
  0x8e   :  { %v92_v6 = vpop.trf.xlu1 }
  0x8f   :  { %v60_v7 = vpop.trf.xlu0  ;;  %112 = vst [vmem:[#allocation2 + $0x38] sm:$0xff] %v92_v6 }
  0x90   :  { %111 = vst [vmem:[#allocation2 + $0x30] sm:$0xff] %v60_v7 }
  0xc2   :  { %v194_v8 = vpop.trf.xlu1 }
  0xc3   :  { %v162_v9 = vpop.trf.xlu0  ;;  %212 = vst [vmem:[#allocation2 + $0x48] sm:$0xff] %v194_v8 }
  0xc4   :  { %211 = vst [vmem:[#allocation2 + $0x40] sm:$0xff] %v162_v9 }
  0xc6   :  { %v195_v10 = vpop.trf.xlu1 }
  0xc7   :  { %v163_v11 = vpop.trf.xlu0  ;;  %214 = vst [vmem:[#allocation2 + $0x58] sm:$0xff] %v195_v10 }
  0xc8   :  { %213 = vst [vmem:[#allocation2 + $0x50] sm:$0xff] %v163_v11 }
  0xca   :  { %v196_v12 = vpop.trf.xlu1 }
  0xcb   :  { %v164_v13 = vpop.trf.xlu0  ;;  %216 = vst [vmem:[#allocation2 + $0x68] sm:$0xff] %v196_v12 }
  0xcc   :  { %215 = vst [vmem:[#allocation2 + $0x60] sm:$0xff] %v164_v13 }
  0xce   :  { %v197_v14 = vpop.trf.xlu1 }
  0xcf   :  { %v165_v15 = vpop.trf.xlu0  ;;  %218 = vst [vmem:[#allocation2 + $0x78] sm:$0xff] %v197_v14 }
  0xd0   :  { %217 = vst [vmem:[#allocation2 + $0x70] sm:$0xff] %v165_v15 }
  0xd1   :  { %281 = shalt.err (!%p278_p4)
}
  0xd2   :  { %s282_s22 = scalar_lea.hbm %s512_s1, 2048 }
  0xd3   :  { %p283_p5 = scmp.ne.s32.totalorder %s512_s1, %s282_s22  ;;  %p286_p6 = scmp.lt.u32.totalorder %s282_s22, %s512_s1 }
  0xd5   :  { %p288_p7 = pnand %p286_p6, %p283_p5 }
  0xd7   :  { %291 = shalt.err (!%p288_p7)
}
  0xd8   :  { %s295_s27 = smov 256   ;;  %s296_s28 = smov 16  }
  0xd9   :  { %230 = dma.vmem_to_hbm [thread:$0]  %s225_s18, 2048, %s512_s1, [#allocation3], %s295_s27, %s295_s27, %s296_s28  }
  0xda   :  { %292 = dma.done.wait [#allocation3], 2048  }
  0xdb   :  { %293 = vsyncadd [#allocation3], 4294965248 }
  0xdc   :  { %234 = vsyncpa [#allocation3], 1 }

</bundles_post_ra>
